<compile_context>
chip_gen: v5e
topology: v5e:2x2
jax: 0.10.0
libtpu: 0.0.40
codegen_flags: <defaults>
</compile_context>

<pallas_src>
import jax
import jax.numpy as jnp
from jax.experimental import pallas as pl
from jax.experimental.pallas import tpu as pltpu


def _pt_module_kernel(x_ref, o_ref):
    # (x * 2 + 3) / 2 ; cast covers integer inputs -> float output.
    x = x_ref[...].astype(o_ref.dtype)
    o_ref[...] = (x * 2.0 + 3.0) * 0.5


def _pointwise(x, out_dtype):
    """Plain-JAX reference math (used for tiny tails / tiny inputs)."""
    x = x.astype(out_dtype)
    return (x * 2.0 + 3.0) * 0.5


def _sublane_multiple(dtype) -> int:
    # 8 rows/vreg for 32-bit, 16 for 16-bit, 32 for 8-bit packed dtypes.
    return max(8, 32 // jnp.dtype(dtype).itemsize)


def _pick_target_tile_bytes() -> int:
    """Chip-aware tile size: bigger tiles pay off on v6e/v7x; v5e must stay
    comfortably under its 16 MiB scoped-VMEM default."""
    try:
        kind = jax.devices()[0].device_kind.lower()
    except Exception:  # pragma: no cover - defensive
        return 2 * 1024 * 1024
    if "v6" in kind or "v7" in kind:
        return 4 * 1024 * 1024
    return 2 * 1024 * 1024


def pt_module_forward(x: jax.Array) -> jax.Array:
    """Pallas implementation of PtModule.forward."""
    orig_shape = x.shape

    if jnp.issubdtype(x.dtype, jnp.floating):
        out_dtype = x.dtype
    else:
        # torch.div(_, 2) is true division -> float result for int/bool inputs.
        out_dtype = jnp.float32

    n = x.size
    if n == 0:
        return jnp.zeros(orig_shape, out_dtype)

    flat = x.reshape(-1)
    n_main = (n // 128) * 128

    if n_main == 0:
        # < 128 elements total: not worth a kernel launch.
        return _pointwise(flat, out_dtype).reshape(orig_shape)

    # ---------------- aligned bulk through the Pallas kernel ----------------
    main = flat if n_main == n else flat[:n_main]

    # Lane width: a multiple of 128 so every store is an unmasked full-width vst.
    lanes = 128
    for cand in (1024, 512, 256, 128):
        if n_main % cand == 0:
            lanes = cand
            break
    rows = n_main // lanes
    main2d = main.reshape(rows, lanes)

    in_item = jnp.dtype(x.dtype).itemsize
    out_item = jnp.dtype(out_dtype).itemsize
    sub = max(_sublane_multiple(x.dtype), _sublane_multiple(out_dtype))

    target_tile_bytes = _pick_target_tile_bytes()
    bytes_per_row = lanes * max(in_item, out_item)
    tile_rows = max(1, target_tile_bytes // bytes_per_row)

    # Guarantee >=2 (ideally >=4) grid steps when there is enough work so the
    # "parallel" axis can be sharded across v7x's two TensorCores.
    if rows >= 4 * sub:
        tile_rows = min(tile_rows, -(-rows // 4))
    elif rows >= 2 * sub:
        tile_rows = min(tile_rows, -(-rows // 2))

    if tile_rows >= rows:
        tile_rows = rows  # single full-extent block (always legal)
    else:
        # Block's second-to-last dim must align to the sublane packing factor.
        tile_rows = max(sub, (tile_rows // sub) * sub)

    grid = pl.cdiv(rows, tile_rows)

    # Explicit scoped-VMEM budget: double-buffered input + output tiles + headroom.
    tile_in_bytes = tile_rows * lanes * in_item
    tile_out_bytes = tile_rows * lanes * out_item
    vmem_limit = 2 * (tile_in_bytes + tile_out_bytes) + (4 << 20)

    main_out = pl.pallas_call(
        _pt_module_kernel,
        out_shape=jax.ShapeDtypeStruct((rows, lanes), out_dtype),
        grid_spec=pltpu.PrefetchScalarGridSpec(
            num_scalar_prefetch=0,
            grid=(grid,),
            in_specs=[pl.BlockSpec((tile_rows, lanes), lambda i: (i, 0))],
            out_specs=pl.BlockSpec((tile_rows, lanes), lambda i: (i, 0)),
        ),
        compiler_params=pltpu.CompilerParams(
            dimension_semantics=("parallel",),
            vmem_limit_bytes=vmem_limit,
        ),
        cost_estimate=pl.CostEstimate(
            flops=3 * n_main,
            transcendentals=0,
            bytes_accessed=n_main * (in_item + out_item),
        ),
    )(main2d)

    y_main = main_out.reshape(n_main)

    if n_main == n:
        return y_main.reshape(orig_shape)

    # ------------- <128-element tail via plain JAX (no full pad) -------------
    y_tail = _pointwise(flat[n_main:], out_dtype)
    return jnp.concatenate([y_main, y_tail]).reshape(orig_shape)


if __name__ == "__main__":
    key = jax.random.PRNGKey(0)

    # Shape implied by the module's per-batch loop: batch=2, channels=4, 16x16.
    x = jax.random.normal(key, (2, 4, 16, 16), dtype=jnp.float32)
    y = pt_module_forward(x)
    jax.block_until_ready(y)

    y_ref = (x * 2.0 + 3.0) / 2.0
    assert y.shape == x.shape and y.dtype == x.dtype
    assert jnp.allclose(y, y_ref, atol=1e-6, rtol=1e-6)

    # Also exercise the non-128-divisible path (bulk kernel + plain-JAX tail).
    x2 = jax.random.normal(jax.random.PRNGKey(1), (2, 3, 5, 7), dtype=jnp.float32)
    y2 = pt_module_forward(x2)
    jax.block_until_ready(y2)
    y2_ref = (x2 * 2.0 + 3.0) / 2.0
    assert y2.shape == x2.shape and y2.dtype == x2.dtype
    assert jnp.allclose(y2, y2_ref, atol=1e-6, rtol=1e-6)

    print("KERNEL_OK")
</pallas_src>

<mosaic_0001>
module attributes {stable_mosaic.version = 11 : i64} {
  func.func @_pt_module_kernel(%arg0: i32, %arg1: memref<2x1024xf32, #tpu.memory_space<vmem>>, %arg2: memref<2x1024xf32, #tpu.memory_space<vmem>>) attributes {dimension_semantics = [#tpu.dimension_semantics<parallel>], iteration_bounds = array<i64: 1>, scalar_prefetch = 0 : i64, scratch_operands = 0 : i64, tpu.core_type = #tpu.core_type<tc>, window_params = [{transform_indices = @transform_0, window_bounds = array<i64: 2, 1024>}, {transform_indices = @transform_1, window_bounds = array<i64: 2, 1024>}]} {
    %c0 = arith.constant 0 : index
    %c0_0 = arith.constant 0 : index
    %0 = vector.load %arg1[%c0, %c0_0] : memref<2x1024xf32, #tpu.memory_space<vmem>>, vector<2x1024xf32>
    %cst = arith.constant 2.000000e+00 : f32
    %1 = vector.broadcast %cst : f32 to vector<2x1024xf32>
    %2 = arith.mulf %0, %1 : vector<2x1024xf32>
    %cst_1 = arith.constant 3.000000e+00 : f32
    %3 = vector.broadcast %cst_1 : f32 to vector<2x1024xf32>
    %4 = arith.addf %2, %3 : vector<2x1024xf32>
    %cst_2 = arith.constant 5.000000e-01 : f32
    %5 = vector.broadcast %cst_2 : f32 to vector<2x1024xf32>
    %6 = arith.mulf %4, %5 : vector<2x1024xf32>
    %c0_3 = arith.constant 0 : index
    %c0_4 = arith.constant 0 : index
    %7 = vector.load %arg2[%c0_3, %c0_4] : memref<2x1024xf32, #tpu.memory_space<vmem>>, vector<2x1024xf32>
    tpu.vector_store %arg2[%c0_3, %c0_4], %6 {strides = array<i32>} : memref<2x1024xf32, #tpu.memory_space<vmem>>, vector<2x1024xf32>,
    return
  }
  func.func @transform_0(%arg0: i32) -> (i32, i32) {
    %c0_i32 = arith.constant 0 : i32
    %c0_i32_0 = arith.constant 0 : i32
    return %arg0, %c0_i32 : i32, i32
  }
  func.func @transform_1(%arg0: i32) -> (i32, i32) {
    %c0_i32 = arith.constant 0 : i32
    %c0_i32_0 = arith.constant 0 : i32
    return %arg0, %c0_i32 : i32, i32
  }
}

</mosaic_0001>

<bundles_post_ra>
// kernel: tpu_custom_call.1
= control target key start
LH: loop header
LB: loop body
LE: loop exit
PB: predicated region body
PF: predicated region fallthrough
CT: control target
= control target key end

     0   :  { %6 = vsyncpa [#allocation3], 0  ;;  %s122_s0 = inlined_call_operand.hbm [shape: f32[2,1024], index: 0, kind: input, shape index: {}]   ;;  %s123_s1 = inlined_call_operand.hbm [shape: f32[2,1024], index: 1, kind: output, shape index: {}]  }
   0x1   :  { %7 = vsyncpa [#allocation4], 0  ;;  %s13_s8 = sshll.u32 %s122_s0, 4  ;;  %s104_s9 = smov [#allocation2]   ;;  %s14_s8 = int_to_ptr.hbm [resolvable:$true] %s13_s8 }
   0x2   :  { %s15_s10 = sshll.u32 %s104_s9, 4  ;;  %s16_s10 = int_to_ptr.vmem [resolvable:$true] %s15_s10 }
   0x3   :  { %18 = dma.hbm_to_vmem [thread:$0]  %s14_s8, 256, %s16_s10, [#allocation3]  }
   0x4   :  { %100 = dma.done.wait [#allocation3], 256  }
   0x5   :  { %101 = vsyncadd [#allocation3], 4294967040  ;;  %v23_v0 = vld [vmem:[#allocation2] sm:$0xff]  ;;  %v24_v1 = vld [vmem:[#allocation2 + $0x8] sm:$0xff]  ;;  %s105_s11 = smov [#allocation5]   ;;  %s40_s15 = sshll.u32 %s123_s1, 4  ;;  %s41_s15 = int_to_ptr.hbm [resolvable:$true] %s40_s15 }
   0x6   :  { %v25_v2 = vmul.f32 2.0, %v23_v0  ;;  %v26_v3 = vmul.f32 2.0, %v24_v1  ;;  %s38_s12 = sshll.u32 %s105_s11, 4  ;;  %s39_s12 = int_to_ptr.vmem [resolvable:$true] %s38_s12 }
   0x8   :  { %v27_v4 = vadd.f32 3.0, %v25_v2  ;;  %v28_v5 = vadd.f32 3.0, %v26_v3 }
   0xa   :  { %v29_v6 = vmul.f32 0.5, %v27_v4  ;;  %v30_v7 = vmul.f32 0.5, %v28_v5 }
   0xc   :  { %31 = vst [vmem:[#allocation5] sm:$0xff] %v29_v6 }
   0xd   :  { %32 = vst [vmem:[#allocation5 + $0x8] sm:$0xff] %v30_v7 }
   0xe   :  { %43 = dma.vmem_to_hbm [thread:$0]  %s39_s12, 256, %s41_s15, [#allocation4]  }
   0xf   :  { %102 = dma.done.wait [#allocation4], 256  }
  0x10   :  { %103 = vsyncadd [#allocation4], 4294967040 }
  0x11   :  { %48 = vsyncpa [#allocation3], 1 }
  0x12   :  { %49 = vsyncpa [#allocation4], 1 }

</bundles_post_ra>
